<compile_context>
chip_gen: v5e
topology: v5e:2x2
jax: 0.10.0
libtpu: 0.0.40
codegen_flags: <defaults>
</compile_context>

<pallas_src>
import functools

import jax
import jax.numpy as jnp
from jax.experimental import pallas as pl
from jax.experimental.pallas import tpu as pltpu


# ---------------------------------------------------------------------------
# Fused kernel.  Grid = (num_cores [parallel], tiles_per_core [arbitrary]).
# Each core accumulates its batch slice into private VMEM scratch and writes
# per-core partial sums at its last step.  Core 0 also computes the W-Gram
# (MXU, NT dot_general) once.
# ---------------------------------------------------------------------------
def _fused_loss_kernel(*refs, margin, b_true, compute_uf, compute_ib):
    pos = [0]

    def take(k):
        out = refs[pos[0]:pos[0] + k]
        pos[0] += k
        return out

    # ---- inputs -----------------------------------------------------------
    h_ref, hp_ref, hn_ref, pp_ref, pn_ref, tp_ref, tn_ref = take(7)
    w_hbm = take(1)[0] if compute_ib else None
    # ---- outputs (per-core partial sums) ----------------------------------
    sqp_o, sqn_o, tpp_o, hin_o = take(4)
    if compute_uf:
        bh_o, bhp_o, bhn_o = take(3)
    if compute_ib:
        ib_o = take(1)[0]
    # ---- scratch -----------------------------------------------------------
    sqp_v, sqn_v, tpp_v, hin_v = take(4)
    if compute_uf:
        bh_s, bhp_s, bhn_s = take(3)
    if compute_ib:
        w_vmem = take(1)[0]

    c = pl.program_id(0)
    i = pl.program_id(1)
    n_steps = pl.num_programs(1)
    last = n_steps - 1
    tb = h_ref.shape[0]

    @pl.when(i == 0)
    def _init():
        sqp_v[...] = jnp.zeros_like(sqp_v)
        sqn_v[...] = jnp.zeros_like(sqn_v)
        tpp_v[...] = jnp.zeros_like(tpp_v)
        hin_v[...] = jnp.zeros_like(hin_v)
        if compute_uf:
            bh_s[...] = jnp.zeros_like(bh_s)
            bhp_s[...] = jnp.zeros_like(bhp_s)
            bhn_s[...] = jnp.zeros_like(bhn_s)

    # Row validity mask for the current (possibly ragged / clamped) tile.
    # Global tile index uses the *unclamped* value so fully-out-of-range tiles
    # contribute nothing.
    t = c * n_steps + i
    row_ids = jax.lax.broadcasted_iota(jnp.int32, (tb, 1), 0) + t * tb
    valid = row_ids < b_true                                        # (tb, 1) bool

    # Hash codes (EUP tanh), f32 accumulation regardless of input dtype.
    # jnp.where (not multiply) so garbage rows never poison the sums with NaN.
    th = jnp.where(valid, jnp.tanh(h_ref[...].astype(jnp.float32)), 0.0)
    thp = jnp.where(valid, jnp.tanh(hp_ref[...].astype(jnp.float32)), 0.0)
    thn = jnp.where(valid, jnp.tanh(hn_ref[...].astype(jnp.float32)), 0.0)

    # Consistency (MSE) partial column sums (reduce-to-scalar deferred to epilogue).
    dpos = pp_ref[...].astype(jnp.float32) - tp_ref[...].astype(jnp.float32)
    dneg = pn_ref[...].astype(jnp.float32) - tn_ref[...].astype(jnp.float32)
    sqp_v[...] += jnp.sum(jnp.where(valid, dpos * dpos, 0.0), axis=0, keepdims=True)
    sqn_v[...] += jnp.sum(jnp.where(valid, dneg * dneg, 0.0), axis=0, keepdims=True)

    # Triplet terms.
    dap = th - thp
    tpp_v[...] += jnp.sum(dap * dap, axis=0, keepdims=True)
    dan = th - thn
    d_an = jnp.sum(dan * dan, axis=1, keepdims=True)                # (tb, 1)
    hinge = jnp.where(valid, jnp.maximum(margin - d_an, 0.0), 0.0)
    hin_v[...] += jnp.reshape(jnp.sum(hinge), (1, 1))

    # Uniform-frequency per-bit sums (skipped entirely when the weight is 0).
    if compute_uf:
        bh_s[...] += jnp.sum(th, axis=0, keepdims=True)
        bhp_s[...] += jnp.sum(thp, axis=0, keepdims=True)
        bhn_s[...] += jnp.sum(thn, axis=0, keepdims=True)

    @pl.when(i == last)
    def _finalize():
        sqp_o[...] = jnp.reshape(jnp.sum(sqp_v[...]), (1, 1, 1))
        sqn_o[...] = jnp.reshape(jnp.sum(sqn_v[...]), (1, 1, 1))
        tpp_o[...] = jnp.reshape(jnp.sum(tpp_v[...]), (1, 1, 1))
        hin_o[...] = jnp.reshape(hin_v[...], (1, 1, 1))
        if compute_uf:
            bh_o[...] = jnp.reshape(bh_s[...], bh_o.shape)
            bhp_o[...] = jnp.reshape(bhp_s[...], bhp_o.shape)
            bhn_o[...] = jnp.reshape(bhn_s[...], bhn_o.shape)
        if compute_ib:
            ib_o[...] = jnp.zeros_like(ib_o)

    if compute_ib:
        @pl.when(jnp.logical_and(i == last, c == 0))
        def _finalize_ib():
            # One-shot DMA of W (no per-step descriptor, no double buffer).
            pltpu.sync_copy(w_hbm, w_vmem)
            w = w_vmem[...].astype(jnp.float32)
            r = w_vmem.shape[0]
            # W @ W^T without materializing a transpose (NT contraction on MXU).
            sym = jax.lax.dot_general(
                w, w, dimension_numbers=(((1,), (1,)), ((), ())),
                preferred_element_type=jnp.float32)
            row = jax.lax.broadcasted_iota(jnp.int32, (r, r), 0)
            col = jax.lax.broadcasted_iota(jnp.int32, (r, r), 1)
            dmat = jnp.where(row == col, sym - 1.0, sym)            # subtract I on the fly
            ib_o[...] = jnp.reshape(jnp.sum(jnp.abs(dmat)) * (1.0 / r), (1, 1, 1))


def _device_num_cores():
    """Number of TensorCores per device (2 on v7x / megacore, else 1)."""
    try:
        dev = jax.devices()[0]
    except Exception:
        return 1
    for attr in ("num_cores", "core_count"):
        val = getattr(dev, attr, None)
        try:
            val = int(val)
        except (TypeError, ValueError):
            continue
        if val > 0:
            return val
    return 1


# ---------------------------------------------------------------------------
# Wrapper (jitted; hyper-parameters are static, as in the module's __init__).
# ---------------------------------------------------------------------------
@functools.partial(
    jax.jit,
    static_argnames=("uniform_frequency_weight", "independent_bit_weight",
                     "margin", "contrastive_weight", "tile_b", "num_cores"))
def loss_v1_triplet_contrastive(
        h, h_pos, h_neg,
        prediction_pos, prediction_neg, target_pos, target_neg,
        model_param=None, *,
        uniform_frequency_weight, independent_bit_weight,
        margin, contrastive_weight, tile_b=2048, num_cores=None):
    """Mirrors Loss_V1_Triplet_Contrastive.forward.  `model_param` stands for
    list(model.parameters())[-2].  Inputs may be f32 or bf16 (accumulation is f32)."""
    b = h.shape[0]
    h2, hp2, hn2 = (x.reshape(b, -1) for x in (h, h_pos, h_neg))
    pp2 = prediction_pos.reshape(b, -1)
    pn2 = prediction_neg.reshape(b, -1)
    tp2 = target_pos.reshape(b, -1)
    tn2 = target_neg.reshape(b, -1)
    n_bits = h2.shape[1]
    m_pos = pp2.shape[1]
    m_neg = pn2.shape[1]

    compute_uf = float(uniform_frequency_weight) > 0.0
    compute_ib = (float(independent_bit_weight) > 0.0) and (model_param is not None)

    if compute_ib:
        w = model_param.reshape(model_param.shape[0], -1)
        w_bytes = int(w.size) * jnp.dtype(w.dtype).itemsize
    else:
        w = None
        w_bytes = 0

    # ---- VMEM-aware batch-tile selection (no HBM padding/copies) ----------
    try:
        vmem_cap = int(pltpu.get_tpu_info().vmem_capacity_bytes)
    except Exception:
        vmem_cap = 64 << 20                      # conservative: v7x per-TC VMEM

    def _isz(x):
        return jnp.dtype(x.dtype).itemsize

    budget = min(40 << 20, vmem_cap // 2)
    per_row = 2 * (_isz(h2) * n_bits + _isz(hp2) * n_bits + _isz(hn2) * n_bits
                   + _isz(pp2) * m_pos + _isz(tp2) * m_pos
                   + _isz(pn2) * m_neg + _isz(tn2) * m_neg)         # double-buffered
    fixed = w_bytes + 4 * (3 * n_bits + m_pos + m_neg + 64) + (1 << 20)
    tb_cap = max(8, (budget - fixed) // max(per_row, 1))
    tb = max(8, (int(min(int(tile_b), tb_cap)) // 8) * 8)
    if b <= tb:
        tb = b
    num_tiles = -(-b // tb)

    cores = _device_num_cores() if num_cores is None else int(num_cores)
    cores = max(1, min(cores, 2, num_tiles))
    tpc = -(-num_tiles // cores)
    max_t = num_tiles - 1

    vmem_limit = int(min(vmem_cap, max(per_row * tb + fixed + (16 << 20), 32 << 20)))

    # ---- specs -------------------------------------------------------------
    def row_map(ci, ii):
        # Clamp so the DMA stays in bounds; the kernel masks with the UNclamped
        # tile index, so fully-out-of-range tiles contribute nothing.
        return (jnp.minimum(ci * tpc + ii, max_t), 0)

    def row_spec(ncols):
        return pl.BlockSpec((tb, ncols), row_map)

    core_scalar_spec = pl.BlockSpec((1, 1, 1), lambda ci, ii: (ci, 0, 0))
    core_bits_spec = pl.BlockSpec((1, 1, n_bits), lambda ci, ii: (ci, 0, 0))

    inputs = [h2, hp2, hn2, pp2, pn2, tp2, tn2]
    in_specs = [row_spec(n_bits), row_spec(n_bits), row_spec(n_bits),
                row_spec(m_pos), row_spec(m_neg),
                row_spec(m_pos), row_spec(m_neg)]
    if compute_ib:
        inputs.append(w)
        in_specs.append(pl.BlockSpec(memory_space=pl.ANY))

    out_shapes = [jax.ShapeDtypeStruct((cores, 1, 1), jnp.float32)] * 4
    out_specs = [core_scalar_spec] * 4
    if compute_uf:
        out_shapes += [jax.ShapeDtypeStruct((cores, 1, n_bits), jnp.float32)] * 3
        out_specs += [core_bits_spec] * 3
    if compute_ib:
        out_shapes.append(jax.ShapeDtypeStruct((cores, 1, 1), jnp.float32))
        out_specs.append(core_scalar_spec)

    scratch = [pltpu.VMEM((1, m_pos), jnp.float32),
               pltpu.VMEM((1, m_neg), jnp.float32),
               pltpu.VMEM((1, n_bits), jnp.float32),
               pltpu.VMEM((1, 1), jnp.float32)]
    if compute_uf:
        scratch += [pltpu.VMEM((1, n_bits), jnp.float32) for _ in range(3)]
    if compute_ib:
        scratch.append(pltpu.VMEM(w.shape, w.dtype))

    kernel = functools.partial(
        _fused_loss_kernel,
        margin=float(margin), b_true=int(b),
        compute_uf=compute_uf, compute_ib=compute_ib)

    grid_spec = pltpu.PrefetchScalarGridSpec(
        num_scalar_prefetch=0,
        grid=(cores, tpc),
        in_specs=in_specs,
        out_specs=tuple(out_specs),
        scratch_shapes=tuple(scratch))

    outs = pl.pallas_call(
        kernel,
        grid_spec=grid_spec,
        out_shape=tuple(out_shapes),
        compiler_params=pltpu.CompilerParams(
            dimension_semantics=("parallel", "arbitrary"),
            vmem_limit_bytes=vmem_limit),
    )(*inputs)

    # ---- tiny cross-core combine (a handful of scalar ops) ----------------
    sq_pos = jnp.sum(outs[0])
    sq_neg = jnp.sum(outs[1])
    trip_pos = jnp.sum(outs[2])
    hinge_sum = jnp.sum(outs[3])

    mse = sq_pos / (b * m_pos) + sq_neg / (b * m_neg)
    trip = (trip_pos + hinge_sum) / b
    pred_loss = mse + float(contrastive_weight) * trip

    nxt = 4
    if compute_uf:
        bits_h = jnp.sum(outs[nxt], axis=(0, 1))
        bits_hp = jnp.sum(outs[nxt + 1], axis=(0, 1))
        bits_hn = jnp.sum(outs[nxt + 2], axis=(0, 1))
        nxt += 3
        uf = (jnp.mean(jnp.abs(bits_h)) + jnp.mean(jnp.abs(bits_hp))
              + jnp.mean(jnp.abs(bits_hn))) / (3.0 * b)
    else:
        uf = jnp.float32(0.0)
    if compute_ib:
        ib = jnp.sum(outs[nxt])       # only core 0 wrote a non-zero value
    else:
        ib = jnp.float32(0.0)

    total = (pred_loss
             + float(uniform_frequency_weight) * uf
             + float(independent_bit_weight) * ib)
    return total, pred_loss, uf, ib


if __name__ == "__main__":
    # Pure-JAX reference (not on the kernel path).
    def ref_loss(hh, hp, hn, pp, pn, tp, tn, Wm, *, ufw, ibw, margin, cw):
        hh, hp, hn, pp, pn, tp, tn = (x.astype(jnp.float32)
                                      for x in (hh, hp, hn, pp, pn, tp, tn))
        th, thp, thn = jnp.tanh(hh), jnp.tanh(hp), jnp.tanh(hn)
        trip = (jnp.mean(jnp.sum((th - thp) ** 2, axis=1))
                + jnp.mean(jnp.maximum(margin - jnp.sum((th - thn) ** 2, axis=1), 0.0)))
        pred = jnp.mean((pp - tp) ** 2) + jnp.mean((pn - tn) ** 2) + cw * trip
        if ufw > 0:
            uf = (jnp.mean(jnp.abs(jnp.mean(th, axis=0)))
                  + jnp.mean(jnp.abs(jnp.mean(thp, axis=0)))
                  + jnp.mean(jnp.abs(jnp.mean(thn, axis=0)))) / 3.0
        else:
            uf = jnp.float32(0.0)
        if ibw > 0 and Wm is not None:
            Wf = Wm.astype(jnp.float32)
            ib = jnp.sum(jnp.abs(Wf @ Wf.T - jnp.eye(Wf.shape[0]))) / Wf.shape[0]
        else:
            ib = jnp.float32(0.0)
        return pred + ufw * uf + ibw * ib, pred, uf, ib

    n, hidden = 32, 64
    ufw, ibw = 0.1, 0.01
    margin, cw = 1.0, 0.5

    # ---- config 1: f32, all terms, single tile ----------------------------
    b = 8
    key = jax.random.PRNGKey(0)
    ks = jax.random.split(key, 8)
    h = jax.random.normal(ks[0], (b, n), dtype=jnp.float32)
    h_pos = jax.random.normal(ks[1], (b, n), dtype=jnp.float32)
    h_neg = jax.random.normal(ks[2], (b, n), dtype=jnp.float32)
    p_pos = jax.random.normal(ks[3], (b, n), dtype=jnp.float32)
    p_neg = jax.random.normal(ks[4], (b, n), dtype=jnp.float32)
    t_pos = jax.random.normal(ks[5], (b, n), dtype=jnp.float32)
    t_neg = jax.random.normal(ks[6], (b, n), dtype=jnp.float32)
    W = 0.1 * jax.random.normal(ks[7], (n, hidden), dtype=jnp.float32)

    total, pred_l, uf_l, ib_l = loss_v1_triplet_contrastive(
        h, h_pos, h_neg, p_pos, p_neg, t_pos, t_neg, W,
        uniform_frequency_weight=ufw, independent_bit_weight=ibw,
        margin=margin, contrastive_weight=cw)
    jax.block_until_ready((total, pred_l, uf_l, ib_l))
    r_t, r_p, r_u, r_i = ref_loss(h, h_pos, h_neg, p_pos, p_neg, t_pos, t_neg, W,
                                  ufw=ufw, ibw=ibw, margin=margin, cw=cw)
    assert jnp.allclose(pred_l, r_p, rtol=1e-5, atol=1e-5)
    assert jnp.allclose(uf_l, r_u, rtol=1e-5, atol=1e-5)
    assert jnp.allclose(ib_l, r_i, rtol=1e-4, atol=1e-4)
    assert jnp.allclose(total, r_t, rtol=1e-4, atol=1e-4)

    # ---- config 2: ragged batch + forced 2-core grid (masking + cross-core
    #      partial-sum combine exercised even on single-core chips) ----------
    b2 = 10
    ks2 = jax.random.split(jax.random.PRNGKey(1), 7)
    args2 = [jax.random.normal(k, (b2, n), dtype=jnp.float32) for k in ks2]
    t2, p2, u2, i2 = loss_v1_triplet_contrastive(
        *args2, W,
        uniform_frequency_weight=ufw, independent_bit_weight=ibw,
        margin=margin, contrastive_weight=cw, tile_b=8, num_cores=2)
    jax.block_until_ready((t2, p2, u2, i2))
    r2 = ref_loss(*args2, W, ufw=ufw, ibw=ibw, margin=margin, cw=cw)
    assert jnp.allclose(p2, r2[1], rtol=1e-5, atol=1e-5)
    assert jnp.allclose(u2, r2[2], rtol=1e-5, atol=1e-5)
    assert jnp.allclose(i2, r2[3], rtol=1e-4, atol=1e-4)
    assert jnp.allclose(t2, r2[0], rtol=1e-4, atol=1e-4)

    # ---- config 3: bf16 inputs, uf/ib terms disabled, ragged multi-tile ----
    b3 = 12
    ks3 = jax.random.split(jax.random.PRNGKey(2), 7)
    args3 = [jax.random.normal(k, (b3, n), dtype=jnp.bfloat16) for k in ks3]
    t3, p3, u3, i3 = loss_v1_triplet_contrastive(
        *args3, None,
        uniform_frequency_weight=0.0, independent_bit_weight=0.0,
        margin=margin, contrastive_weight=cw, tile_b=8)
    jax.block_until_ready((t3, p3, u3, i3))
    r3 = ref_loss(*args3, None, ufw=0.0, ibw=0.0, margin=margin, cw=cw)
    assert jnp.allclose(p3, r3[1], rtol=1e-5, atol=1e-5)
    assert jnp.allclose(u3, r3[2], rtol=1e-5, atol=1e-5)
    assert jnp.allclose(i3, r3[3], rtol=1e-5, atol=1e-5)
    assert jnp.allclose(t3, r3[0], rtol=1e-5, atol=1e-5)

    print("KERNEL_OK")
</pallas_src>

<mosaic_0001>
module attributes {stable_mosaic.version = 11 : i64} {
  func.func @_fused_loss_kernel(%arg0: i32, %arg1: i32, %arg2: memref<8x32xf32, #tpu.memory_space<vmem>>, %arg3: memref<8x32xf32, #tpu.memory_space<vmem>>, %arg4: memref<8x32xf32, #tpu.memory_space<vmem>>, %arg5: memref<8x32xf32, #tpu.memory_space<vmem>>, %arg6: memref<8x32xf32, #tpu.memory_space<vmem>>, %arg7: memref<8x32xf32, #tpu.memory_space<vmem>>, %arg8: memref<8x32xf32, #tpu.memory_space<vmem>>, %arg9: memref<32x64xf32, #tpu.memory_space<any>>, %arg10: memref<1x1x1xf32, #tpu.memory_space<vmem>>, %arg11: memref<1x1x1xf32, #tpu.memory_space<vmem>>, %arg12: memref<1x1x1xf32, #tpu.memory_space<vmem>>, %arg13: memref<1x1x1xf32, #tpu.memory_space<vmem>>, %arg14: memref<1x1x32xf32, #tpu.memory_space<vmem>>, %arg15: memref<1x1x32xf32, #tpu.memory_space<vmem>>, %arg16: memref<1x1x32xf32, #tpu.memory_space<vmem>>, %arg17: memref<1x1x1xf32, #tpu.memory_space<vmem>>, %arg18: memref<1x32xf32, #tpu.memory_space<vmem>>, %arg19: memref<1x32xf32, #tpu.memory_space<vmem>>, %arg20: memref<1x32xf32, #tpu.memory_space<vmem>>, %arg21: memref<1x1xf32, #tpu.memory_space<vmem>>, %arg22: memref<1x32xf32, #tpu.memory_space<vmem>>, %arg23: memref<1x32xf32, #tpu.memory_space<vmem>>, %arg24: memref<1x32xf32, #tpu.memory_space<vmem>>, %arg25: memref<32x64xf32, #tpu.memory_space<vmem>>) attributes {dimension_semantics = [#tpu.dimension_semantics<parallel>, #tpu.dimension_semantics<arbitrary>], iteration_bounds = array<i64: 1, 1>, scalar_prefetch = 0 : i64, scratch_operands = 8 : i64, tpu.core_type = #tpu.core_type<tc>, window_params = [{transform_indices = @transform_0, window_bounds = array<i64: 8, 32>}, {transform_indices = @transform_1, window_bounds = array<i64: 8, 32>}, {transform_indices = @transform_2, window_bounds = array<i64: 8, 32>}, {transform_indices = @transform_3, window_bounds = array<i64: 8, 32>}, {transform_indices = @transform_4, window_bounds = array<i64: 8, 32>}, {transform_indices = @transform_5, window_bounds = array<i64: 8, 32>}, {transform_indices = @transform_6, window_bounds = array<i64: 8, 32>}, {}, {transform_indices = @transform_8, window_bounds = array<i64: 1, 1, 1>}, {transform_indices = @transform_9, window_bounds = array<i64: 1, 1, 1>}, {transform_indices = @transform_10, window_bounds = array<i64: 1, 1, 1>}, {transform_indices = @transform_11, window_bounds = array<i64: 1, 1, 1>}, {transform_indices = @transform_12, window_bounds = array<i64: 1, 1, 32>}, {transform_indices = @transform_13, window_bounds = array<i64: 1, 1, 32>}, {transform_indices = @transform_14, window_bounds = array<i64: 1, 1, 32>}, {transform_indices = @transform_15, window_bounds = array<i64: 1, 1, 1>}]} {
    %c0_i32 = arith.constant 0 : i32
    %0 = arith.cmpi eq, %arg1, %c0_i32 : i32
    %1 = arith.extui %0 : i1 to i32
    %c0_i32_0 = arith.constant 0 : i32
    %2 = arith.cmpi ne, %1, %c0_i32_0 : i32
    scf.if %2 {
      %cst_63 = arith.constant 0.000000e+00 : f32
      %103 = vector.broadcast %cst_63 : f32 to vector<1x32xf32>
      %c0_64 = arith.constant 0 : index
      %c0_65 = arith.constant 0 : index
      %104 = vector.load %arg18[%c0_64, %c0_65] : memref<1x32xf32, #tpu.memory_space<vmem>>, vector<1x32xf32>
      tpu.vector_store %arg18[%c0_64, %c0_65], %103 {strides = array<i32>} : memref<1x32xf32, #tpu.memory_space<vmem>>, vector<1x32xf32>,
      %cst_66 = arith.constant 0.000000e+00 : f32
      %105 = vector.broadcast %cst_66 : f32 to vector<1x32xf32>
      %c0_67 = arith.constant 0 : index
      %c0_68 = arith.constant 0 : index
      %106 = vector.load %arg19[%c0_67, %c0_68] : memref<1x32xf32, #tpu.memory_space<vmem>>, vector<1x32xf32>
      tpu.vector_store %arg19[%c0_67, %c0_68], %105 {strides = array<i32>} : memref<1x32xf32, #tpu.memory_space<vmem>>, vector<1x32xf32>,
      %cst_69 = arith.constant 0.000000e+00 : f32
      %107 = vector.broadcast %cst_69 : f32 to vector<1x32xf32>
      %c0_70 = arith.constant 0 : index
      %c0_71 = arith.constant 0 : index
      %108 = vector.load %arg20[%c0_70, %c0_71] : memref<1x32xf32, #tpu.memory_space<vmem>>, vector<1x32xf32>
      tpu.vector_store %arg20[%c0_70, %c0_71], %107 {strides = array<i32>} : memref<1x32xf32, #tpu.memory_space<vmem>>, vector<1x32xf32>,
      %cst_72 = arith.constant 0.000000e+00 : f32
      %109 = vector.broadcast %cst_72 : f32 to vector<1x1xf32>
      %c0_73 = arith.constant 0 : index
      %c0_74 = arith.constant 0 : index
      %110 = vector.load %arg21[%c0_73, %c0_74] : memref<1x1xf32, #tpu.memory_space<vmem>>, vector<1x1xf32>
      tpu.vector_store %arg21[%c0_73, %c0_74], %109 {strides = array<i32>} : memref<1x1xf32, #tpu.memory_space<vmem>>, vector<1x1xf32>,
      %cst_75 = arith.constant 0.000000e+00 : f32
      %111 = vector.broadcast %cst_75 : f32 to vector<1x32xf32>
      %c0_76 = arith.constant 0 : index
      %c0_77 = arith.constant 0 : index
      %112 = vector.load %arg22[%c0_76, %c0_77] : memref<1x32xf32, #tpu.memory_space<vmem>>, vector<1x32xf32>
      tpu.vector_store %arg22[%c0_76, %c0_77], %111 {strides = array<i32>} : memref<1x32xf32, #tpu.memory_space<vmem>>, vector<1x32xf32>,
      %cst_78 = arith.constant 0.000000e+00 : f32
      %113 = vector.broadcast %cst_78 : f32 to vector<1x32xf32>
      %c0_79 = arith.constant 0 : index
      %c0_80 = arith.constant 0 : index
      %114 = vector.load %arg23[%c0_79, %c0_80] : memref<1x32xf32, #tpu.memory_space<vmem>>, vector<1x32xf32>
      tpu.vector_store %arg23[%c0_79, %c0_80], %113 {strides = array<i32>} : memref<1x32xf32, #tpu.memory_space<vmem>>, vector<1x32xf32>,
      %cst_81 = arith.constant 0.000000e+00 : f32
      %115 = vector.broadcast %cst_81 : f32 to vector<1x32xf32>
      %c0_82 = arith.constant 0 : index
      %c0_83 = arith.constant 0 : index
      %116 = vector.load %arg24[%c0_82, %c0_83] : memref<1x32xf32, #tpu.memory_space<vmem>>, vector<1x32xf32>
      tpu.vector_store %arg24[%c0_82, %c0_83], %115 {strides = array<i32>} : memref<1x32xf32, #tpu.memory_space<vmem>>, vector<1x32xf32>,
    } else {
    }
    %c1_i32 = arith.constant 1 : i32
    %3 = arith.muli %arg0, %c1_i32 : i32
    %4 = arith.addi %3, %arg1 : i32
    %5 = tpu.iota {dimensions = array<i32: 0>} : vector<8x1xi32>
    %c8_i32 = arith.constant 8 : i32
    %6 = arith.muli %4, %c8_i32 : i32
    %7 = vector.broadcast %6 : i32 to vector<8x1xi32>
    %8 = arith.addi %5, %7 : vector<8x1xi32>
    %c8_i32_1 = arith.constant 8 : i32
    %9 = vector.broadcast %c8_i32_1 : i32 to vector<8x1xi32>
    %10 = arith.cmpi slt, %8, %9 : vector<8x1xi32>
    %c0 = arith.constant 0 : index
    %c0_2 = arith.constant 0 : index
    %11 = vector.load %arg2[%c0, %c0_2] : memref<8x32xf32, #tpu.memory_space<vmem>>, vector<8x32xf32>
    %12 = math.tanh %11 : vector<8x32xf32>
    %cst = arith.constant 0.000000e+00 : f32
    %13 = vector.shape_cast %10 : vector<8x1xi1> to vector<8x1xi1>
    %14 = vector.broadcast %13 : vector<8x1xi1> to vector<8x32xi1>
    %15 = vector.broadcast %cst : f32 to vector<8x32xf32>
    %16 = arith.select %14, %12, %15 : vector<8x32xi1>, vector<8x32xf32>
    %c0_3 = arith.constant 0 : index
    %c0_4 = arith.constant 0 : index
    %17 = vector.load %arg3[%c0_3, %c0_4] : memref<8x32xf32, #tpu.memory_space<vmem>>, vector<8x32xf32>
    %18 = math.tanh %17 : vector<8x32xf32>
    %cst_5 = arith.constant 0.000000e+00 : f32
    %19 = vector.shape_cast %10 : vector<8x1xi1> to vector<8x1xi1>
    %20 = vector.broadcast %19 : vector<8x1xi1> to vector<8x32xi1>
    %21 = vector.broadcast %cst_5 : f32 to vector<8x32xf32>
    %22 = arith.select %20, %18, %21 : vector<8x32xi1>, vector<8x32xf32>
    %c0_6 = arith.constant 0 : index
    %c0_7 = arith.constant 0 : index
    %23 = vector.load %arg4[%c0_6, %c0_7] : memref<8x32xf32, #tpu.memory_space<vmem>>, vector<8x32xf32>
    %24 = math.tanh %23 : vector<8x32xf32>
    %cst_8 = arith.constant 0.000000e+00 : f32
    %25 = vector.shape_cast %10 : vector<8x1xi1> to vector<8x1xi1>
    %26 = vector.broadcast %25 : vector<8x1xi1> to vector<8x32xi1>
    %27 = vector.broadcast %cst_8 : f32 to vector<8x32xf32>
    %28 = arith.select %26, %24, %27 : vector<8x32xi1>, vector<8x32xf32>
    %c0_9 = arith.constant 0 : index
    %c0_10 = arith.constant 0 : index
    %29 = vector.load %arg5[%c0_9, %c0_10] : memref<8x32xf32, #tpu.memory_space<vmem>>, vector<8x32xf32>
    %c0_11 = arith.constant 0 : index
    %c0_12 = arith.constant 0 : index
    %30 = vector.load %arg7[%c0_11, %c0_12] : memref<8x32xf32, #tpu.memory_space<vmem>>, vector<8x32xf32>
    %31 = arith.subf %29, %30 : vector<8x32xf32>
    %c0_13 = arith.constant 0 : index
    %c0_14 = arith.constant 0 : index
    %32 = vector.load %arg6[%c0_13, %c0_14] : memref<8x32xf32, #tpu.memory_space<vmem>>, vector<8x32xf32>
    %c0_15 = arith.constant 0 : index
    %c0_16 = arith.constant 0 : index
    %33 = vector.load %arg8[%c0_15, %c0_16] : memref<8x32xf32, #tpu.memory_space<vmem>>, vector<8x32xf32>
    %34 = arith.subf %32, %33 : vector<8x32xf32>
    %c0_17 = arith.constant 0 : index
    %c0_18 = arith.constant 0 : index
    %35 = vector.load %arg18[%c0_17, %c0_18] : memref<1x32xf32, #tpu.memory_space<vmem>>, vector<1x32xf32>
    %36 = arith.mulf %31, %31 : vector<8x32xf32>
    %cst_19 = arith.constant 0.000000e+00 : f32
    %37 = vector.shape_cast %10 : vector<8x1xi1> to vector<8x1xi1>
    %38 = vector.broadcast %37 : vector<8x1xi1> to vector<8x32xi1>
    %39 = vector.broadcast %cst_19 : f32 to vector<8x32xf32>
    %40 = arith.select %38, %36, %39 : vector<8x32xi1>, vector<8x32xf32>
    %cst_20 = arith.constant dense<0.000000e+00> : vector<32xf32>
    %41 = vector.multi_reduction <add>, %40, %cst_20 [0] : vector<8x32xf32> to vector<32xf32>
    %42 = vector.shape_cast %41 : vector<32xf32> to vector<1x32xf32>
    %43 = arith.addf %35, %42 : vector<1x32xf32>
    %c0_21 = arith.constant 0 : index
    %c0_22 = arith.constant 0 : index
    %44 = vector.load %arg18[%c0_21, %c0_22] : memref<1x32xf32, #tpu.memory_space<vmem>>, vector<1x32xf32>
    tpu.vector_store %arg18[%c0_21, %c0_22], %43 {strides = array<i32>} : memref<1x32xf32, #tpu.memory_space<vmem>>, vector<1x32xf32>,
    %c0_23 = arith.constant 0 : index
    %c0_24 = arith.constant 0 : index
    %45 = vector.load %arg19[%c0_23, %c0_24] : memref<1x32xf32, #tpu.memory_space<vmem>>, vector<1x32xf32>
    %46 = arith.mulf %34, %34 : vector<8x32xf32>
    %cst_25 = arith.constant 0.000000e+00 : f32
    %47 = vector.shape_cast %10 : vector<8x1xi1> to vector<8x1xi1>
    %48 = vector.broadcast %47 : vector<8x1xi1> to vector<8x32xi1>
    %49 = vector.broadcast %cst_25 : f32 to vector<8x32xf32>
    %50 = arith.select %48, %46, %49 : vector<8x32xi1>, vector<8x32xf32>
    %cst_26 = arith.constant dense<0.000000e+00> : vector<32xf32>
    %51 = vector.multi_reduction <add>, %50, %cst_26 [0] : vector<8x32xf32> to vector<32xf32>
    %52 = vector.shape_cast %51 : vector<32xf32> to vector<1x32xf32>
    %53 = arith.addf %45, %52 : vector<1x32xf32>
    %c0_27 = arith.constant 0 : index
    %c0_28 = arith.constant 0 : index
    %54 = vector.load %arg19[%c0_27, %c0_28] : memref<1x32xf32, #tpu.memory_space<vmem>>, vector<1x32xf32>
    tpu.vector_store %arg19[%c0_27, %c0_28], %53 {strides = array<i32>} : memref<1x32xf32, #tpu.memory_space<vmem>>, vector<1x32xf32>,
    %55 = arith.subf %16, %22 : vector<8x32xf32>
    %c0_29 = arith.constant 0 : index
    %c0_30 = arith.constant 0 : index
    %56 = vector.load %arg20[%c0_29, %c0_30] : memref<1x32xf32, #tpu.memory_space<vmem>>, vector<1x32xf32>
    %57 = arith.mulf %55, %55 : vector<8x32xf32>
    %cst_31 = arith.constant dense<0.000000e+00> : vector<32xf32>
    %58 = vector.multi_reduction <add>, %57, %cst_31 [0] : vector<8x32xf32> to vector<32xf32>
    %59 = vector.shape_cast %58 : vector<32xf32> to vector<1x32xf32>
    %60 = arith.addf %56, %59 : vector<1x32xf32>
    %c0_32 = arith.constant 0 : index
    %c0_33 = arith.constant 0 : index
    %61 = vector.load %arg20[%c0_32, %c0_33] : memref<1x32xf32, #tpu.memory_space<vmem>>, vector<1x32xf32>
    tpu.vector_store %arg20[%c0_32, %c0_33], %60 {strides = array<i32>} : memref<1x32xf32, #tpu.memory_space<vmem>>, vector<1x32xf32>,
    %62 = arith.subf %16, %28 : vector<8x32xf32>
    %63 = arith.mulf %62, %62 : vector<8x32xf32>
    %cst_34 = arith.constant dense<0.000000e+00> : vector<8xf32>
    %64 = vector.multi_reduction <add>, %63, %cst_34 [1] : vector<8x32xf32> to vector<8xf32>
    %65 = vector.shape_cast %64 : vector<8xf32> to vector<8x1xf32>
    %cst_35 = arith.constant 1.000000e+00 : f32
    %66 = vector.broadcast %cst_35 : f32 to vector<8x1xf32>
    %67 = arith.subf %66, %65 : vector<8x1xf32>
    %cst_36 = arith.constant 0.000000e+00 : f32
    %68 = vector.broadcast %cst_36 : f32 to vector<8x1xf32>
    %69 = arith.maximumf %67, %68 : vector<8x1xf32>
    %cst_37 = arith.constant 0.000000e+00 : f32
    %70 = vector.broadcast %cst_37 : f32 to vector<8x1xf32>
    %71 = arith.select %10, %69, %70 : vector<8x1xi1>, vector<8x1xf32>
    %c0_38 = arith.constant 0 : index
    %c0_39 = arith.constant 0 : index
    %72 = vector.load %arg21[%c0_38, %c0_39] : memref<1x1xf32, #tpu.memory_space<vmem>>, vector<1x1xf32>
    %73 = vector.shape_cast %71 : vector<8x1xf32> to vector<1x8x1xf32>
    %cst_40 = arith.constant dense<0.000000e+00> : vector<1xf32>
    %74 = vector.multi_reduction <add>, %73, %cst_40 [1, 2] : vector<1x8x1xf32> to vector<1xf32>
    %75 = vector.shape_cast %74 : vector<1xf32> to vector<1x1x1xf32>
    %76 = vector.extract %75[0, 0, 0] : f32 from vector<1x1x1xf32>
    %77 = vector.broadcast %76 : f32 to vector<1x1xf32>
    %78 = arith.addf %72, %77 : vector<1x1xf32>
    %c0_41 = arith.constant 0 : index
    %c0_42 = arith.constant 0 : index
    %79 = vector.load %arg21[%c0_41, %c0_42] : memref<1x1xf32, #tpu.memory_space<vmem>>, vector<1x1xf32>
    tpu.vector_store %arg21[%c0_41, %c0_42], %78 {strides = array<i32>} : memref<1x1xf32, #tpu.memory_space<vmem>>, vector<1x1xf32>,
    %c0_43 = arith.constant 0 : index
    %c0_44 = arith.constant 0 : index
    %80 = vector.load %arg22[%c0_43, %c0_44] : memref<1x32xf32, #tpu.memory_space<vmem>>, vector<1x32xf32>
    %cst_45 = arith.constant dense<0.000000e+00> : vector<32xf32>
    %81 = vector.multi_reduction <add>, %16, %cst_45 [0] : vector<8x32xf32> to vector<32xf32>
    %82 = vector.shape_cast %81 : vector<32xf32> to vector<1x32xf32>
    %83 = arith.addf %80, %82 : vector<1x32xf32>
    %c0_46 = arith.constant 0 : index
    %c0_47 = arith.constant 0 : index
    %84 = vector.load %arg22[%c0_46, %c0_47] : memref<1x32xf32, #tpu.memory_space<vmem>>, vector<1x32xf32>
    tpu.vector_store %arg22[%c0_46, %c0_47], %83 {strides = array<i32>} : memref<1x32xf32, #tpu.memory_space<vmem>>, vector<1x32xf32>,
    %c0_48 = arith.constant 0 : index
    %c0_49 = arith.constant 0 : index
    %85 = vector.load %arg23[%c0_48, %c0_49] : memref<1x32xf32, #tpu.memory_space<vmem>>, vector<1x32xf32>
    %cst_50 = arith.constant dense<0.000000e+00> : vector<32xf32>
    %86 = vector.multi_reduction <add>, %22, %cst_50 [0] : vector<8x32xf32> to vector<32xf32>
    %87 = vector.shape_cast %86 : vector<32xf32> to vector<1x32xf32>
    %88 = arith.addf %85, %87 : vector<1x32xf32>
    %c0_51 = arith.constant 0 : index
    %c0_52 = arith.constant 0 : index
    %89 = vector.load %arg23[%c0_51, %c0_52] : memref<1x32xf32, #tpu.memory_space<vmem>>, vector<1x32xf32>
    tpu.vector_store %arg23[%c0_51, %c0_52], %88 {strides = array<i32>} : memref<1x32xf32, #tpu.memory_space<vmem>>, vector<1x32xf32>,
    %c0_53 = arith.constant 0 : index
    %c0_54 = arith.constant 0 : index
    %90 = vector.load %arg24[%c0_53, %c0_54] : memref<1x32xf32, #tpu.memory_space<vmem>>, vector<1x32xf32>
    %cst_55 = arith.constant dense<0.000000e+00> : vector<32xf32>
    %91 = vector.multi_reduction <add>, %28, %cst_55 [0] : vector<8x32xf32> to vector<32xf32>
    %92 = vector.shape_cast %91 : vector<32xf32> to vector<1x32xf32>
    %93 = arith.addf %90, %92 : vector<1x32xf32>
    %c0_56 = arith.constant 0 : index
    %c0_57 = arith.constant 0 : index
    %94 = vector.load %arg24[%c0_56, %c0_57] : memref<1x32xf32, #tpu.memory_space<vmem>>, vector<1x32xf32>
    tpu.vector_store %arg24[%c0_56, %c0_57], %93 {strides = array<i32>} : memref<1x32xf32, #tpu.memory_space<vmem>>, vector<1x32xf32>,
    %c0_i32_58 = arith.constant 0 : i32
    %95 = arith.cmpi eq, %arg1, %c0_i32_58 : i32
    %96 = arith.extui %95 : i1 to i32
    %c0_i32_59 = arith.constant 0 : i32
    %97 = arith.cmpi ne, %96, %c0_i32_59 : i32
    scf.if %97 {
      %c0_63 = arith.constant 0 : index
      %c0_64 = arith.constant 0 : index
      %103 = vector.load %arg18[%c0_63, %c0_64] : memref<1x32xf32, #tpu.memory_space<vmem>>, vector<1x32xf32>
      %104 = vector.shape_cast %103 : vector<1x32xf32> to vector<1x1x32xf32>
      %cst_65 = arith.constant dense<0.000000e+00> : vector<1xf32>
      %105 = vector.multi_reduction <add>, %104, %cst_65 [1, 2] : vector<1x1x32xf32> to vector<1xf32>
      %106 = vector.shape_cast %105 : vector<1xf32> to vector<1x1x1xf32>
      %107 = vector.extract %106[0, 0, 0] : f32 from vector<1x1x1xf32>
      %108 = vector.broadcast %107 : f32 to vector<1x1x1xf32>
      %c0_66 = arith.constant 0 : index
      %c0_67 = arith.constant 0 : index
      %c0_68 = arith.constant 0 : index
      %109 = vector.load %arg10[%c0_66, %c0_67, %c0_68] : memref<1x1x1xf32, #tpu.memory_space<vmem>>, vector<1x1x1xf32>
      tpu.vector_store %arg10[%c0_66, %c0_67, %c0_68], %108 {strides = array<i32>} : memref<1x1x1xf32, #tpu.memory_space<vmem>>, vector<1x1x1xf32>,
      %c0_69 = arith.constant 0 : index
      %c0_70 = arith.constant 0 : index
      %110 = vector.load %arg19[%c0_69, %c0_70] : memref<1x32xf32, #tpu.memory_space<vmem>>, vector<1x32xf32>
      %111 = vector.shape_cast %110 : vector<1x32xf32> to vector<1x1x32xf32>
      %cst_71 = arith.constant dense<0.000000e+00> : vector<1xf32>
      %112 = vector.multi_reduction <add>, %111, %cst_71 [1, 2] : vector<1x1x32xf32> to vector<1xf32>
      %113 = vector.shape_cast %112 : vector<1xf32> to vector<1x1x1xf32>
      %114 = vector.extract %113[0, 0, 0] : f32 from vector<1x1x1xf32>
      %115 = vector.broadcast %114 : f32 to vector<1x1x1xf32>
      %c0_72 = arith.constant 0 : index
      %c0_73 = arith.constant 0 : index
      %c0_74 = arith.constant 0 : index
      %116 = vector.load %arg11[%c0_72, %c0_73, %c0_74] : memref<1x1x1xf32, #tpu.memory_space<vmem>>, vector<1x1x1xf32>
      tpu.vector_store %arg11[%c0_72, %c0_73, %c0_74], %115 {strides = array<i32>} : memref<1x1x1xf32, #tpu.memory_space<vmem>>, vector<1x1x1xf32>,
      %c0_75 = arith.constant 0 : index
      %c0_76 = arith.constant 0 : index
      %117 = vector.load %arg20[%c0_75, %c0_76] : memref<1x32xf32, #tpu.memory_space<vmem>>, vector<1x32xf32>
      %118 = vector.shape_cast %117 : vector<1x32xf32> to vector<1x1x32xf32>
      %cst_77 = arith.constant dense<0.000000e+00> : vector<1xf32>
      %119 = vector.multi_reduction <add>, %118, %cst_77 [1, 2] : vector<1x1x32xf32> to vector<1xf32>
      %120 = vector.shape_cast %119 : vector<1xf32> to vector<1x1x1xf32>
      %121 = vector.extract %120[0, 0, 0] : f32 from vector<1x1x1xf32>
      %122 = vector.broadcast %121 : f32 to vector<1x1x1xf32>
      %c0_78 = arith.constant 0 : index
      %c0_79 = arith.constant 0 : index
      %c0_80 = arith.constant 0 : index
      %123 = vector.load %arg12[%c0_78, %c0_79, %c0_80] : memref<1x1x1xf32, #tpu.memory_space<vmem>>, vector<1x1x1xf32>
      tpu.vector_store %arg12[%c0_78, %c0_79, %c0_80], %122 {strides = array<i32>} : memref<1x1x1xf32, #tpu.memory_space<vmem>>, vector<1x1x1xf32>,
      %c0_81 = arith.constant 0 : index
      %c0_82 = arith.constant 0 : index
      %124 = vector.load %arg21[%c0_81, %c0_82] : memref<1x1xf32, #tpu.memory_space<vmem>>, vector<1x1xf32>
      %125 = vector.shape_cast %124 : vector<1x1xf32> to vector<1x1x1xf32>
      %c0_83 = arith.constant 0 : index
      %c0_84 = arith.constant 0 : index
      %c0_85 = arith.constant 0 : index
      %126 = vector.load %arg13[%c0_83, %c0_84, %c0_85] : memref<1x1x1xf32, #tpu.memory_space<vmem>>, vector<1x1x1xf32>
      tpu.vector_store %arg13[%c0_83, %c0_84, %c0_85], %125 {strides = array<i32>} : memref<1x1x1xf32, #tpu.memory_space<vmem>>, vector<1x1x1xf32>,
      %c0_86 = arith.constant 0 : index
      %c0_87 = arith.constant 0 : index
      %127 = vector.load %arg22[%c0_86, %c0_87] : memref<1x32xf32, #tpu.memory_space<vmem>>, vector<1x32xf32>
      %128 = vector.shape_cast %127 : vector<1x32xf32> to vector<1x1x32xf32>
      %c0_88 = arith.constant 0 : index
      %c0_89 = arith.constant 0 : index
      %c0_90 = arith.constant 0 : index
      %129 = vector.load %arg14[%c0_88, %c0_89, %c0_90] : memref<1x1x32xf32, #tpu.memory_space<vmem>>, vector<1x1x32xf32>
      tpu.vector_store %arg14[%c0_88, %c0_89, %c0_90], %128 {strides = array<i32>} : memref<1x1x32xf32, #tpu.memory_space<vmem>>, vector<1x1x32xf32>,
      %c0_91 = arith.constant 0 : index
      %c0_92 = arith.constant 0 : index
      %130 = vector.load %arg23[%c0_91, %c0_92] : memref<1x32xf32, #tpu.memory_space<vmem>>, vector<1x32xf32>
      %131 = vector.shape_cast %130 : vector<1x32xf32> to vector<1x1x32xf32>
      %c0_93 = arith.constant 0 : index
      %c0_94 = arith.constant 0 : index
      %c0_95 = arith.constant 0 : index
      %132 = vector.load %arg15[%c0_93, %c0_94, %c0_95] : memref<1x1x32xf32, #tpu.memory_space<vmem>>, vector<1x1x32xf32>
      tpu.vector_store %arg15[%c0_93, %c0_94, %c0_95], %131 {strides = array<i32>} : memref<1x1x32xf32, #tpu.memory_space<vmem>>, vector<1x1x32xf32>,
      %c0_96 = arith.constant 0 : index
      %c0_97 = arith.constant 0 : index
      %133 = vector.load %arg24[%c0_96, %c0_97] : memref<1x32xf32, #tpu.memory_space<vmem>>, vector<1x32xf32>
      %134 = vector.shape_cast %133 : vector<1x32xf32> to vector<1x1x32xf32>
      %c0_98 = arith.constant 0 : index
      %c0_99 = arith.constant 0 : index
      %c0_100 = arith.constant 0 : index
      %135 = vector.load %arg16[%c0_98, %c0_99, %c0_100] : memref<1x1x32xf32, #tpu.memory_space<vmem>>, vector<1x1x32xf32>
      tpu.vector_store %arg16[%c0_98, %c0_99, %c0_100], %134 {strides = array<i32>} : memref<1x1x32xf32, #tpu.memory_space<vmem>>, vector<1x1x32xf32>,
      %cst_101 = arith.constant 0.000000e+00 : f32
      %136 = vector.broadcast %cst_101 : f32 to vector<1x1x1xf32>
      %c0_102 = arith.constant 0 : index
      %c0_103 = arith.constant 0 : index
      %c0_104 = arith.constant 0 : index
      %137 = vector.load %arg17[%c0_102, %c0_103, %c0_104] : memref<1x1x1xf32, #tpu.memory_space<vmem>>, vector<1x1x1xf32>
      tpu.vector_store %arg17[%c0_102, %c0_103, %c0_104], %136 {strides = array<i32>} : memref<1x1x1xf32, #tpu.memory_space<vmem>>, vector<1x1x1xf32>,
    } else {
    }
    %c0_i32_60 = arith.constant 0 : i32
    %98 = arith.cmpi eq, %arg1, %c0_i32_60 : i32
    %c0_i32_61 = arith.constant 0 : i32
    %99 = arith.cmpi eq, %arg0, %c0_i32_61 : i32
    %100 = arith.andi %98, %99 : i1
    %101 = arith.extui %100 : i1 to i32
    %c0_i32_62 = arith.constant 0 : i32
    %102 = arith.cmpi ne, %101, %c0_i32_62 : i32
    scf.if %102 {
      "tpu.region"() ({
        %119 = tpu.sem_alloc : memref<!tpu.dma_semaphore, #tpu.memory_space<semaphore_mem>>
        tpu.enqueue_dma source(%arg9 : memref<32x64xf32, #tpu.memory_space<any>>) target(%arg25 : memref<32x64xf32, #tpu.memory_space<vmem>>) target_semaphore(%119 : memref<!tpu.dma_semaphore, #tpu.memory_space<semaphore_mem>>)
        tpu.wait_dma2 semaphore(%119 : memref<!tpu.dma_semaphore, #tpu.memory_space<semaphore_mem>>) src(%arg9 : memref<32x64xf32, #tpu.memory_space<any>>) dst(%arg25 : memref<32x64xf32, #tpu.memory_space<vmem>>)
        tpu.yield
      }) : () -> ()
      %c0_63 = arith.constant 0 : index
      %c0_64 = arith.constant 0 : index
      %103 = vector.load %arg25[%c0_63, %c0_64] : memref<32x64xf32, #tpu.memory_space<vmem>>, vector<32x64xf32>
      %cst_65 = arith.constant dense<0.000000e+00> : vector<32x32xf32>
      %104 = tpu.matmul %103, %103, %cst_65 {dimension_numbers = #tpu.dot_dimension_numbers<[1], [1], [0], [0], [0, 0, 1, 0], [], []>} : vector<32x64xf32>, vector<32x64xf32>, vector<32x32xf32> -> vector<32x32xf32>
      %105 = tpu.iota {dimensions = array<i32: 0>} : vector<32x32xi32>
      %106 = tpu.iota {dimensions = array<i32: 1>} : vector<32x32xi32>
      %107 = arith.cmpi eq, %105, %106 : vector<32x32xi32>
      %cst_66 = arith.constant 1.000000e+00 : f32
      %108 = vector.broadcast %cst_66 : f32 to vector<32x32xf32>
      %109 = arith.subf %104, %108 : vector<32x32xf32>
      %110 = arith.select %107, %109, %104 : vector<32x32xi1>, vector<32x32xf32>
      %111 = math.absf %110 : vector<32x32xf32>
      %112 = vector.shape_cast %111 : vector<32x32xf32> to vector<1x32x32xf32>
      %cst_67 = arith.constant dense<0.000000e+00> : vector<1xf32>
      %113 = vector.multi_reduction <add>, %112, %cst_67 [1, 2] : vector<1x32x32xf32> to vector<1xf32>
      %114 = vector.shape_cast %113 : vector<1xf32> to vector<1x1x1xf32>
      %115 = vector.extract %114[0, 0, 0] : f32 from vector<1x1x1xf32>
      %cst_68 = arith.constant 3.125000e-02 : f32
      %116 = arith.mulf %115, %cst_68 : f32
      %117 = vector.broadcast %116 : f32 to vector<1x1x1xf32>
      %c0_69 = arith.constant 0 : index
      %c0_70 = arith.constant 0 : index
      %c0_71 = arith.constant 0 : index
      %118 = vector.load %arg17[%c0_69, %c0_70, %c0_71] : memref<1x1x1xf32, #tpu.memory_space<vmem>>, vector<1x1x1xf32>
      tpu.vector_store %arg17[%c0_69, %c0_70, %c0_71], %117 {strides = array<i32>} : memref<1x1x1xf32, #tpu.memory_space<vmem>>, vector<1x1x1xf32>,
    } else {
    }
    return
  }
  func.func @transform_0(%arg0: i32, %arg1: i32) -> (i32, i32) {
    %c1_i32 = arith.constant 1 : i32
    %0 = arith.muli %arg0, %c1_i32 : i32
    %1 = arith.addi %0, %arg1 : i32
    %c0_i32 = arith.constant 0 : i32
    %2 = arith.minsi %1, %c0_i32 : i32
    %c0_i32_0 = arith.constant 0 : i32
    %c0_i32_1 = arith.constant 0 : i32
    return %2, %c0_i32_0 : i32, i32
  }
  func.func @transform_1(%arg0: i32, %arg1: i32) -> (i32, i32) {
    %c1_i32 = arith.constant 1 : i32
    %0 = arith.muli %arg0, %c1_i32 : i32
    %1 = arith.addi %0, %arg1 : i32
    %c0_i32 = arith.constant 0 : i32
    %2 = arith.minsi %1, %c0_i32 : i32
    %c0_i32_0 = arith.constant 0 : i32
    %c0_i32_1 = arith.constant 0 : i32
    return %2, %c0_i32_0 : i32, i32
  }
  func.func @transform_2(%arg0: i32, %arg1: i32) -> (i32, i32) {
    %c1_i32 = arith.constant 1 : i32
    %0 = arith.muli %arg0, %c1_i32 : i32
    %1 = arith.addi %0, %arg1 : i32
    %c0_i32 = arith.constant 0 : i32
    %2 = arith.minsi %1, %c0_i32 : i32
    %c0_i32_0 = arith.constant 0 : i32
    %c0_i32_1 = arith.constant 0 : i32
    return %2, %c0_i32_0 : i32, i32
  }
  func.func @transform_3(%arg0: i32, %arg1: i32) -> (i32, i32) {
    %c1_i32 = arith.constant 1 : i32
    %0 = arith.muli %arg0, %c1_i32 : i32
    %1 = arith.addi %0, %arg1 : i32
    %c0_i32 = arith.constant 0 : i32
    %2 = arith.minsi %1, %c0_i32 : i32
    %c0_i32_0 = arith.constant 0 : i32
    %c0_i32_1 = arith.constant 0 : i32
    return %2, %c0_i32_0 : i32, i32
  }
  func.func @transform_4(%arg0: i32, %arg1: i32) -> (i32, i32) {
    %c1_i32 = arith.constant 1 : i32
    %0 = arith.muli %arg0, %c1_i32 : i32
    %1 = arith.addi %0, %arg1 : i32
    %c0_i32 = arith.constant 0 : i32
    %2 = arith.minsi %1, %c0_i32 : i32
    %c0_i32_0 = arith.constant 0 : i32
    %c0_i32_1 = arith.constant 0 : i32
    return %2, %c0_i32_0 : i32, i32
  }
  func.func @transform_5(%arg0: i32, %arg1: i32) -> (i32, i32) {
    %c1_i32 = arith.constant 1 : i32
    %0 = arith.muli %arg0, %c1_i32 : i32
    %1 = arith.addi %0, %arg1 : i32
    %c0_i32 = arith.constant 0 : i32
    %2 = arith.minsi %1, %c0_i32 : i32
    %c0_i32_0 = arith.constant 0 : i32
    %c0_i32_1 = arith.constant 0 : i32
    return %2, %c0_i32_0 : i32, i32
  }
  func.func @transform_6(%arg0: i32, %arg1: i32) -> (i32, i32) {
    %c1_i32 = arith.constant 1 : i32
    %0 = arith.muli %arg0, %c1_i32 : i32
    %1 = arith.addi %0, %arg1 : i32
    %c0_i32 = arith.constant 0 : i32
    %2 = arith.minsi %1, %c0_i32 : i32
    %c0_i32_0 = arith.constant 0 : i32
    %c0_i32_1 = arith.constant 0 : i32
    return %2, %c0_i32_0 : i32, i32
  }
  func.func @transform_8(%arg0: i32, %arg1: i32) -> (i32, i32, i32) {
    %c0_i32 = arith.constant 0 : i32
    %c0_i32_0 = arith.constant 0 : i32
    %c0_i32_1 = arith.constant 0 : i32
    return %arg0, %c0_i32, %c0_i32_0 : i32, i32, i32
  }
  func.func @transform_9(%arg0: i32, %arg1: i32) -> (i32, i32, i32) {
    %c0_i32 = arith.constant 0 : i32
    %c0_i32_0 = arith.constant 0 : i32
    %c0_i32_1 = arith.constant 0 : i32
    return %arg0, %c0_i32, %c0_i32_0 : i32, i32, i32
  }
  func.func @transform_10(%arg0: i32, %arg1: i32) -> (i32, i32, i32) {
    %c0_i32 = arith.constant 0 : i32
    %c0_i32_0 = arith.constant 0 : i32
    %c0_i32_1 = arith.constant 0 : i32
    return %arg0, %c0_i32, %c0_i32_0 : i32, i32, i32
  }
  func.func @transform_11(%arg0: i32, %arg1: i32) -> (i32, i32, i32) {
    %c0_i32 = arith.constant 0 : i32
    %c0_i32_0 = arith.constant 0 : i32
    %c0_i32_1 = arith.constant 0 : i32
    return %arg0, %c0_i32, %c0_i32_0 : i32, i32, i32
  }
  func.func @transform_12(%arg0: i32, %arg1: i32) -> (i32, i32, i32) {
    %c0_i32 = arith.constant 0 : i32
    %c0_i32_0 = arith.constant 0 : i32
    %c0_i32_1 = arith.constant 0 : i32
    return %arg0, %c0_i32, %c0_i32_0 : i32, i32, i32
  }
  func.func @transform_13(%arg0: i32, %arg1: i32) -> (i32, i32, i32) {
    %c0_i32 = arith.constant 0 : i32
    %c0_i32_0 = arith.constant 0 : i32
    %c0_i32_1 = arith.constant 0 : i32
    return %arg0, %c0_i32, %c0_i32_0 : i32, i32, i32
  }
  func.func @transform_14(%arg0: i32, %arg1: i32) -> (i32, i32, i32) {
    %c0_i32 = arith.constant 0 : i32
    %c0_i32_0 = arith.constant 0 : i32
    %c0_i32_1 = arith.constant 0 : i32
    return %arg0, %c0_i32, %c0_i32_0 : i32, i32, i32
  }
  func.func @transform_15(%arg0: i32, %arg1: i32) -> (i32, i32, i32) {
    %c0_i32 = arith.constant 0 : i32
    %c0_i32_0 = arith.constant 0 : i32
    %c0_i32_1 = arith.constant 0 : i32
    return %arg0, %c0_i32, %c0_i32_0 : i32, i32, i32
  }
}

</mosaic_0001>

<bundles_post_ra>
// kernel: loss_v1_triplet_contrastive.1
= control target key start
LH: loop header
LB: loop body
LE: loop exit
PB: predicated region body
PF: predicated region fallthrough
CT: control target
= control target key end

     0   :  { %21 = vsyncpa [#allocation11], 0  ;;  %s1181_s0 = inlined_call_operand.hbm [shape: f32[8,32], index: 0, kind: input, shape index: {}]   ;;  %s1182_s1 = inlined_call_operand.hbm [shape: f32[8,32], index: 1, kind: input, shape index: {}]   ;;  %s1183_s2 = inlined_call_operand.hbm [shape: f32[8,32], index: 2, kind: input, shape index: {}]   ;;  %s1184_s3 = inlined_call_operand.hbm [shape: f32[8,32], index: 3, kind: input, shape index: {}]   ;;  %s1185_s4 = inlined_call_operand.hbm [shape: f32[8,32], index: 4, kind: input, shape index: {}]   ;;  %s1186_s5 = inlined_call_operand.hbm [shape: f32[8,32], index: 5, kind: input, shape index: {}]   ;;  %s1187_s6 = inlined_call_operand.hbm [shape: f32[8,32], index: 6, kind: input, shape index: {}]   ;;  %s1188_s7 = inlined_call_operand.hbm [shape: f32[32,64], index: 7, kind: input, shape index: {}]   ;;  %s1189_s8 = inlined_call_operand.hbm [shape: f32[1,1,1], index: 8, kind: output, shape index: {0}]   ;;  %s1190_s9 = inlined_call_operand.hbm [shape: f32[1,1,1], index: 9, kind: output, shape index: {1}]   ;;  %s1191_s10 = inlined_call_operand.hbm [shape: f32[1,1,1], index: 10, kind: output, shape index: {2}]   ;;  %s1192_s11 = inlined_call_operand.hbm [shape: f32[1,1,1], index: 11, kind: output, shape index: {3}]   ;;  %s1193_s12 = inlined_call_operand.vmem [shape: f32[1,1,32], index: 12, kind: output, shape index: {4}]   ;;  %s1194_s13 = inlined_call_operand.vmem [shape: f32[1,1,32], index: 13, kind: output, shape index: {5}]   ;;  %s1195_s14 = inlined_call_operand.vmem [shape: f32[1,1,32], index: 14, kind: output, shape index: {6}]   ;;  %s1196_s15 = inlined_call_operand.hbm [shape: f32[1,1,1], index: 15, kind: output, shape index: {7}]  }
   0x1   :  { %22 = vsyncpa [#allocation14], 0 }
   0x2   :  { %23 = vsyncpa [#allocation17], 0 }
   0x3   :  { %24 = vsyncpa [#allocation20], 0 }
   0x4   :  { %25 = vsyncpa [#allocation12], 0 }
   0x5   :  { %26 = vsyncpa [#allocation24], 0  ;;  %s54_s20 = sshll.u32 %s1182_s1, 4  ;;  %s55_s20 = int_to_ptr.hbm [resolvable:$true] %s54_s20 }
   0x6   :  { %27 = vsyncpa [#allocation27], 0  ;;  %s966_s21 = smov [#allocation13]   ;;  %s86_s25 = sshll.u32 %s1184_s3, 4  ;;  %s87_s25 = int_to_ptr.hbm [resolvable:$true] %s86_s25 }
   0x7   :  { %s56_s22 = sshll.u32 %s966_s21, 4  ;;  %s967_s26 = smov [#allocation16]   ;;  %s57_s22 = int_to_ptr.vmem [resolvable:$true] %s56_s22 }
   0x8   :  { %59 = dma.hbm_to_vmem [thread:$0]  %s55_s20, 128, %s57_s22, [#allocation14]  }
   0x9   :  { %s88_s27 = sshll.u32 %s967_s26, 4  ;;  %s118_s30 = sshll.u32 %s1186_s5, 4  ;;  %s89_s27 = int_to_ptr.vmem [resolvable:$true] %s88_s27  ;;  %s119_s30 = int_to_ptr.hbm [resolvable:$true] %s118_s30 }
   0xa   :  { %91 = dma.hbm_to_vmem [thread:$0]  %s87_s25, 128, %s89_s27, [#allocation17]  }
   0xb   :  { %s38_s17 = sshll.u32 %s1181_s0, 4  ;;  %s968_s18 = smov [#allocation19]   ;;  %s39_s17 = int_to_ptr.hbm [resolvable:$true] %s38_s17 }
   0xc   :  { %s120_s19 = sshll.u32 %s968_s18, 4  ;;  %s969_s3 = smov [#allocation10]   ;;  %s121_s19 = int_to_ptr.vmem [resolvable:$true] %s120_s19 }
   0xd   :  { %123 = dma.hbm_to_vmem [thread:$0]  %s119_s30, 128, %s121_s19, [#allocation20]  }
   0xe   :  { %s40_s20 = sshll.u32 %s969_s3, 4  ;;  %s70_s23 = sshll.u32 %s1183_s2, 4  ;;  %s41_s20 = int_to_ptr.vmem [resolvable:$true] %s40_s20  ;;  %s71_s23 = int_to_ptr.hbm [resolvable:$true] %s70_s23 }
   0xf   :  { %43 = dma.hbm_to_vmem [thread:$0]  %s39_s17, 128, %s41_s20, [#allocation11]  }
  0x10   :  { %s102_s25 = sshll.u32 %s1185_s4, 4  ;;  %s970_s26 = smov [#allocation15]   ;;  %s103_s25 = int_to_ptr.hbm [resolvable:$true] %s102_s25 }
  0x11   :  { %s72_s0 = sshll.u32 %s970_s26, 4  ;;  %s971_s27 = smov [#allocation18]   ;;  %s73_s0 = int_to_ptr.vmem [resolvable:$true] %s72_s0 }
  0x12   :  { %75 = dma.hbm_to_vmem [thread:$0]  %s71_s23, 128, %s73_s0, [#allocation14]  }
  0x13   :  { %s104_s28 = sshll.u32 %s971_s27, 4  ;;  %s134_s1 = sshll.u32 %s1187_s6, 4  ;;  %s105_s28 = int_to_ptr.vmem [resolvable:$true] %s104_s28  ;;  %s135_s1 = int_to_ptr.hbm [resolvable:$true] %s134_s1 }
  0x14   :  { %107 = dma.hbm_to_vmem [thread:$0]  %s103_s25, 128, %s105_s28, [#allocation17]  }
  0x15   :  { %s972_s2 = smov [#allocation21]  }
  0x16   :  { %s136_s16 = sshll.u32 %s972_s2, 4  ;;  %s137_s16 = int_to_ptr.vmem [resolvable:$true] %s136_s16 }
  0x17   :  { %139 = dma.hbm_to_vmem [thread:$0]  %s135_s1, 128, %s137_s16, [#allocation20]  }
  0x18   :  { %950 = dma.done.wait [#allocation11], 128  }
  0x19   :  { %951 = vsyncadd [#allocation11], 4294967168 }
  0x1a   :  { %952 = dma.done.wait [#allocation14], 256  }
  0x1b   :  { %953 = vsyncadd [#allocation14], 4294967040 }
  0x1c   :  { %954 = dma.done.wait [#allocation17], 256  }
  0x1d   :  { %955 = vsyncadd [#allocation17], 4294967040 }
  0x1e   :  { %956 = dma.done.wait [#allocation20], 256  }
  0x1f   :  { %957 = vsyncadd [#allocation20], 4294967040  ;;  %vm193_vm0 = vcmask 253952   ;;  %v973_v0 = vmov 0.0   ;;  %v209_v1 = vld [vmem:[#allocation10] sm:$0xff]  ;;  %v214_v2 = vld [vmem:[#allocation13] sm:$0xff] }
  0x20   :  { %194 = vst.msk [vmem:[#allocation2] sm:$0x1] %vm193_vm0, %v973_v0  ;;  %v217_v3 = vld [vmem:[#allocation15] sm:$0xff]  ;;  %632 = vtanh.f32 %v209_v1  ;;  %v220_v4 = vld [vmem:[#allocation16] sm:$0xff]  ;;  %v221_v5 = vld [vmem:[#allocation19] sm:$0xff]  ;;  %vm229_vm1 = vcmask 261120  }
  0x21   :  { %195 = vst.msk [vmem:[#allocation3] sm:$0x1] %vm193_vm0, %v973_v0  ;;  %v223_v6 = vld [vmem:[#allocation18] sm:$0xff]  ;;  %634 = vtanh.f32 %v214_v2  ;;  %v222_v7 = vsub.f32 %v220_v4, %v221_v5  ;;  %v224_v8 = vld [vmem:[#allocation21] sm:$0xff]  ;;  %vm273_vm2 = vcmask 7168   ;;  %vm197_vm3 = vcmask 0  }
  0x22   :  { %196 = vst.msk [vmem:[#allocation4] sm:$0x1] %vm193_vm0, %v973_v0  ;;  %636 = vtanh.f32 %v217_v3  ;;  %v225_v9 = vsub.f32 %v223_v6, %v224_v8 }
  0x23   :  { %199 = vst.msk [vmem:[#allocation6] sm:$0x1] %vm193_vm0, %v973_v0  ;;  %v227_v10 = vmul.f32 %v222_v7, %v222_v7 }
  0x24   :  { %200 = vst.msk [vmem:[#allocation7] sm:$0x1] %vm193_vm0, %v973_v0  ;;  %v241_v11 = vmul.f32 %v225_v9, %v225_v9 }
  0x25   :  { %201 = vst.msk [vmem:[#allocation8] sm:$0x1] %vm193_vm0, %v973_v0  ;;  %v230_v12 = vsel %vm229_vm1, %v227_v10, 0.0 }
  0x26   :  { %v633_v13 = vpop.eup %632  ;;  %v231_v14 = vrot.slane %v230_v12, 4  ;;  %v243_v15 = vsel %vm229_vm1, %v241_v11, 0.0  ;;  %198 = vst.msk [vmem:[#allocation5] sm:$0x1] %vm197_vm3, %v973_v0 }
  0x27   :  { %v635_v16 = vpop.eup %634  ;;  %v244_v17 = vrot.slane %v243_v15, 4  ;;  %v289_v18 = vsel %vm229_vm1, %v633_v13, 0.0  ;;  %v226_v48 = vld [vmem:[#allocation2] sm:$0x1]  ;;  %368 = vst.msk [vmem:[#allocation28] sm:$0x1] %vm197_vm3, %v973_v0 }
  0x28   :  { %v637_v19 = vpop.eup %636  ;;  %v232_v20 = vadd.f32 %v231_v14, %v230_v12  ;;  %v290_v21 = vrot.slane %v289_v18, 4  ;;  %v299_v22 = vsel %vm229_vm1, %v635_v16, 0.0  ;;  %v252_v23 = vsub.f32 %v633_v13, %v635_v16  ;;  %v240_v53 = vld [vmem:[#allocation3] sm:$0x1] }
  0x29   :  { %v245_v24 = vadd.f32 %v244_v17, %v243_v15  ;;  %v264_v25 = vsub.f32 %v633_v13, %v637_v19  ;;  %v300_v26 = vrot.slane %v299_v22, 4  ;;  %v309_v27 = vsel %vm229_vm1, %v637_v19, 0.0  ;;  %v253_v7 = vld [vmem:[#allocation4] sm:$0x1] }
  0x2a   :  { %v233_v28 = vrot.slane %v232_v20, 2  ;;  %v291_v29 = vadd.f32 %v290_v21, %v289_v18  ;;  %v310_v30 = vrot.slane %v309_v27, 4  ;;  %v254_v31 = vmul.f32 %v252_v23, %v252_v23  ;;  %v288_v57 = vld [vmem:[#allocation6] sm:$0x1] }
  0x2b   :  { %v246_v32 = vrot.slane %v245_v24, 2  ;;  %v265_v33 = vmul.f32 %v264_v25, %v264_v25  ;;  %v301_v34 = vadd.f32 %v300_v26, %v299_v22  ;;  %v298_v61 = vld [vmem:[#allocation7] sm:$0x1] }
  0x2c   :  { %v234_v35 = vadd.f32 %v233_v28, %v232_v20  ;;  %v292_v36 = vrot.slane %v291_v29, 2  ;;  %v311_v37 = vadd.f32 %v310_v30, %v309_v27  ;;  %v255_v38 = vsel %vm229_vm1, %v254_v31, 0.0  ;;  %v308_v2 = vld [vmem:[#allocation8] sm:$0x1] }
  0x2d   :  { %v247_v39 = vadd.f32 %v246_v32, %v245_v24  ;;  %v266_v40 = vsel %vm229_vm1, %v265_v33, 0.0  ;;  %v302_v41 = vrot.slane %v301_v34, 2  ;;  %v256_v42 = vrot.slane %v255_v38, 4 }
  0x2e   :  { %v235_v43 = vrot.slane %v234_v35, 1  ;;  %v293_v44 = vadd.f32 %v292_v36, %v291_v29  ;;  %v312_v45 = vrot.slane %v311_v37, 2  ;;  %267 = vadd.xlane.f32.xlu0 %v266_v40  ;;  %v203_v24 = vlaneseq }
  0x2f   :  { %v248_v46 = vrot.slane %v247_v39, 1  ;;  %v303_v47 = vadd.f32 %v302_v41, %v301_v34  ;;  %v257_v49 = vadd.f32 %v256_v42, %v255_v38 }
  0x30   :  { %v236_v50 = vadd.f32 %v235_v43, %v234_v35  ;;  %v294_v51 = vrot.slane %v293_v44, 1  ;;  %v313_v52 = vadd.f32 %v312_v45, %v311_v37  ;;  %v1122_v25 = vshrl.u32 %v203_v24, 7 }
  0x31   :  { %v249_v54 = vadd.f32 %v248_v46, %v247_v39  ;;  %v304_v55 = vrot.slane %v303_v47, 1  ;;  %v258_v56 = vrot.slane %v257_v49, 2 }
  0x32   :  { %v295_v58 = vadd.f32 %v294_v51, %v293_v44  ;;  %v314_v59 = vrot.slane %v313_v52, 1  ;;  %v237_v60 = vadd.f32 %v236_v50, %v226_v48 }
  0x33   :  { %v305_v62 = vadd.f32 %v304_v55, %v303_v47  ;;  %v250_v63 = vadd.f32 %v249_v54, %v240_v53  ;;  %v259_v1 = vadd.f32 %v258_v56, %v257_v49  ;;  %v272_v53 = vld [vmem:[#allocation5] sm:$0x1] }
  0x34   :  { %v315_v3 = vadd.f32 %v314_v59, %v313_v52  ;;  %v296_v4 = vadd.f32 %v295_v58, %v288_v57  ;;  %239 = vst.msk [vmem:[#allocation2] sm:$0x1] %vm193_vm0, %v237_v60 }
  0x35   :  { %v260_v5 = vrot.slane %v259_v1, 1  ;;  %v306_v6 = vadd.f32 %v305_v62, %v298_v61  ;;  %251 = vst.msk [vmem:[#allocation3] sm:$0x1] %vm193_vm0, %v250_v63 }
  0x36   :  { %297 = vst.msk [vmem:[#allocation6] sm:$0x1] %vm193_vm0, %v296_v4  ;;  %v316_v8 = vadd.f32 %v315_v3, %v308_v2 }
  0x37   :  { %v261_v9 = vadd.f32 %v260_v5, %v259_v1  ;;  %307 = vst.msk [vmem:[#allocation7] sm:$0x1] %vm193_vm0, %v306_v6 }
  0x38   :  { %317 = vst.msk [vmem:[#allocation8] sm:$0x1] %vm193_vm0, %v316_v8 }
  0x39   :  { %v262_v10 = vadd.f32 %v261_v9, %v253_v7 }
  0x3b   :  { %263 = vst.msk [vmem:[#allocation4] sm:$0x1] %vm193_vm0, %v262_v10  ;;  %v321_v14 = vld [vmem:[#allocation2] sm:$0x1] }
  0x3c   :  { %v322_v15 = vsel %vm193_vm0, %v321_v14, 0.0  ;;  %v334_v17 = vld [vmem:[#allocation3] sm:$0x1] }
  0x3d   :  { %v362_v11 = vld [vmem:[#allocation6] sm:$0x1]  ;;  %323 = vadd.xlane.f32.xlu1 %v322_v15  ;;  %v335_v19 = vsel %vm193_vm0, %v334_v17, 0.0 }
  0x3e   :  { %363 = vst.msk [vmem:[%s1193_s12] sm:$0x1] %vm193_vm0, %v362_v11  ;;  %v364_v12 = vld [vmem:[#allocation7] sm:$0x1] }
  0x3f   :  { %365 = vst.msk [vmem:[%s1194_s13] sm:$0x1] %vm193_vm0, %v364_v12  ;;  %v366_v13 = vld [vmem:[#allocation8] sm:$0x1] }
  0x40   :  { %367 = vst.msk [vmem:[%s1195_s14] sm:$0x1] %vm193_vm0, %v366_v13 }
  0x42   :  { %v347_v16 = vld [vmem:[#allocation4] sm:$0x1] }
  0x43   :  { %v348_v18 = vsel %vm193_vm0, %v347_v16, 0.0 }
  0x44   :  { %349 = vadd.xlane.f32.xlu2 %v348_v18 }
  0x45   :  { %336 = vadd.xlane.f32.xlu1 %v335_v19 }
  0xa1   :  { %v268_v20 = vpop.xlane.xlu0 %267 }
  0xa2   :  { %v269_v21 = vsub.f32 1.0, %v268_v20 }
  0xa4   :  { %v270_v22 = vmax.f32 %v269_v21, 0.0 }
  0xa6   :  { %v274_v23 = vsel %vm273_vm2, %v270_v22, 0.0 }
  0xa7   :  { %275 = vadd.xlane.f32.xlu0 %v274_v23 }
  0xb0   :  { %v324_v26 = vpop.xlane.xlu1 %323 }
  0xb1   :  { %v325_v30 = vrot.slane %v324_v26, 4 }
  0xb3   :  { %v326_v33 = vadd.f32 %v325_v30, %v324_v26 }
  0xb5   :  { %v327_v36 = vrot.slane %v326_v33, 2 }
  0xb7   :  { %v350_v28 = vpop.xlane.xlu2 %349  ;;  %v328_v43 = vadd.f32 %v327_v36, %v326_v33 }
  0xb8   :  { %v337_v27 = vpop.xlane.xlu1 %336  ;;  %v351_v31 = vrot.slane %v350_v28, 4 }
  0xb9   :  { %v338_v29 = vrot.slane %v337_v27, 4  ;;  %v329_v46 = vrot.slane %v328_v43, 1 }
  0xba   :  { %v352_v34 = vadd.f32 %v351_v31, %v350_v28 }
  0xbb   :  { %v339_v32 = vadd.f32 %v338_v29, %v337_v27  ;;  %v330_v51 = vadd.f32 %v329_v46, %v328_v43 }
  0xbc   :  { %v353_v38 = vrot.slane %v352_v34, 2 }
  0xbd   :  { %v340_v35 = vrot.slane %v339_v32, 2 }
  0xbe   :  { %v354_v42 = vadd.f32 %v353_v38, %v352_v34 }
  0xbf   :  { %v341_v41 = vadd.f32 %v340_v35, %v339_v32 }
  0xc0   :  { %v355_v47 = vrot.slane %v354_v42, 1 }
  0xc1   :  { %v342_v0 = vrot.slane %v341_v41, 1 }
  0xc2   :  { %v356_v52 = vadd.f32 %v355_v47, %v354_v42 }
  0xc3   :  { %v343_v50 = vadd.f32 %v342_v0, %v341_v41 }
 0x11a   :  { %v276_v37 = vpop.xlane.xlu0 %275 }
 0x11b   :  { %v277_v39 = vrot.slane %v276_v37, 4 }
 0x11d   :  { %v278_v40 = vadd.f32 %v277_v39, %v276_v37 }
 0x11f   :  { %v279_v44 = vrot.slane %v278_v40, 2 }
 0x121   :  { %v280_v45 = vadd.f32 %v279_v44, %v278_v40 }
 0x123   :  { %v281_v48 = vrot.slane %v280_v45, 1 }
 0x125   :  { %v282_v49 = vadd.f32 %v281_v48, %v280_v45 }
 0x127   :  { %608 = vpush %v282_v49 }
 0x128   :  { %610 = vpush %v330_v51 }
 0x129   :  { %612 = vpush %v343_v50 }
 0x12a   :  { %614 = vpush %v356_v52 }
 0x158   :  { %s609_s12 = spop %608 }
 0x159   :  { %v284_v54 = vstv %s609_s12  ;;  %s611_s13 = spop %610 }
 0x15a   :  { %v285_v55 = vadd.f32 %v284_v54, %v272_v53  ;;  %v332_v56 = vstv %s611_s13  ;;  %s613_s14 = spop %612 }
 0x15b   :  { %333 = vst.msk [vmem:[#allocation22] sm:$0x1] %vm197_vm3, %v332_v56  ;;  %v345_v57 = vstv %s613_s14  ;;  %s615_s20 = spop %614 }
 0x15c   :  { %287 = vst.msk [vmem:[#allocation5] sm:$0x1] %vm197_vm3, %v285_v55  ;;  %v358_v58 = vstv %s615_s20 }
 0x15d   :  { %346 = vst.msk [vmem:[#allocation23] sm:$0x1] %vm197_vm3, %v345_v57 }
 0x15e   :  { %359 = vst.msk [vmem:[#allocation25] sm:$0x1] %vm197_vm3, %v358_v58 }
 0x163   :  { %v360_v59 = vld [vmem:[#allocation5] sm:$0x1] }
 0x164   :  { %361 = vst.msk [vmem:[#allocation26] sm:$0x1] %vm197_vm3, %v360_v59 }
 0x165   :  { %s381_s23 = sshll.u32 %s1188_s7, 4  ;;  %s974_s5 = smov [#allocation9]   ;;  %s382_s23 = int_to_ptr.hbm [resolvable:$true] %s381_s23 }
 0x166   :  { %s383_s24 = sshll.u32 %s974_s5, 4  ;;  %s384_s24 = int_to_ptr.vmem [resolvable:$true] %s383_s24 }
 0x167   :  { %386 = dma.hbm_to_vmem [thread:$0]  %s382_s23, 512, %s384_s24, [#allocation29] }
 0x168   :  { %958 = dma.done.wait [#allocation29], 512 }
 0x169   :  { %959 = vsyncadd [#allocation29], 4294966784  ;;  %v393_v60 = vld [vmem:[#allocation9 + $0x18] sm:$0xff]  ;;  %vm394_vm4 = vcmask 523264   ;;  %v392_v61 = vld [vmem:[#allocation9 + $0x10] sm:$0xff]  ;;  %v440_v1 = vand.u32 127, %v203_v24 }
 0x16a   :  { %597 = vmatpush.xpose.msk.msra.mxu2 %vm394_vm4, %v393_v60  ;;  %598 = vmatpush.xpose.msk.msra.mxu3 %vm394_vm4, %v393_v60  ;;  %v391_v62 = vld [vmem:[#allocation9 + $0x8] sm:$0xff]  ;;  %v390_v63 = vld [vmem:[#allocation9] sm:$0xff]  ;;  %v436_v2 = vadd.s32 8, %v1122_v25  ;;  %v437_v7 = vadd.s32 16, %v1122_v25  ;;  %v438_v8 = vadd.s32 24, %v1122_v25  ;;  %s975_s7 = smov [#allocation23]  }
 0x16b   :  { %584 = vmatpush.xpose.msk.msra.mxu0 %vm394_vm4, %v393_v60  ;;  %596 = vmatpush.xpose.msk.msra.mxu1 %vm394_vm4, %v393_v60  ;;  %vm441_vm5 = vcmp.eq.s32.totalorder %v1122_v25, %v440_v1  ;;  %s492_s25 = sshll.u32 %s975_s7, 4  ;;  %s494_s27 = sshll.u32 %s1190_s9, 4  ;;  %s493_s25 = int_to_ptr.vmem [resolvable:$true] %s492_s25  ;;  %s495_s27 = int_to_ptr.hbm [resolvable:$true] %s494_s27 }
 0x16c   :  { %vm442_vm6 = vcmp.eq.s32.totalorder %v436_v2, %v440_v1  ;;  %vm443_vm7 = vcmp.eq.s32.totalorder %v437_v7, %v440_v1  ;;  %vm444_vm8 = vcmp.eq.s32.totalorder %v438_v8, %v440_v1  ;;  %497 = dma.vmem_to_hbm [thread:$0]  %s493_s25, 16, %s495_s27, [#allocation24]  }
 0x16d   :  { %s976_s28 = smov [#allocation26]   ;;  %s516_s2 = sshll.u32 %s1192_s11, 4  ;;  %s517_s2 = int_to_ptr.hbm [resolvable:$true] %s516_s2 }
 0x16e   :  { %600 = vmatpush.xpose.msk.msra.mxu2 %vm394_vm4, %v392_v61  ;;  %601 = vmatpush.xpose.msk.msra.mxu3 %vm394_vm4, %v392_v61  ;;  %s514_s29 = sshll.u32 %s976_s28, 4  ;;  %s483_s6 = sshll.u32 %s1189_s8, 4  ;;  %s515_s29 = int_to_ptr.vmem [resolvable:$true] %s514_s29  ;;  %s484_s6 = int_to_ptr.hbm [resolvable:$true] %s483_s6 }
 0x16f   :  { %585 = vmatpush.xpose.msk.msra.mxu0 %vm394_vm4, %v392_v61  ;;  %599 = vmatpush.xpose.msk.msra.mxu1 %vm394_vm4, %v392_v61  ;;  %519 = dma.vmem_to_hbm [thread:$0]  %s515_s29, 16, %s517_s2, [#allocation27]  }
 0x170   :  { %s977_s17 = smov [#allocation22]   ;;  %s978_s9 = smov [#allocation25]  }
 0x171   :  { %s481_s18 = sshll.u32 %s977_s17, 4  ;;  %s503_s19 = sshll.u32 %s978_s9, 4  ;;  %s482_s18 = int_to_ptr.vmem [resolvable:$true] %s481_s18  ;;  %s504_s19 = int_to_ptr.vmem [resolvable:$true] %s503_s19 }
 0x172   :  { %603 = vmatpush.xpose.msk.msra.mxu2 %vm394_vm4, %v391_v62  ;;  %604 = vmatpush.xpose.msk.msra.mxu3 %vm394_vm4, %v391_v62  ;;  %486 = dma.vmem_to_hbm [thread:$0]  %s482_s18, 16, %s484_s6, [#allocation12]  }
 0x173   :  { %586 = vmatpush.xpose.msk.msra.mxu0 %vm394_vm4, %v391_v62  ;;  %602 = vmatpush.xpose.msk.msra.mxu1 %vm394_vm4, %v391_v62  ;;  %s505_s13 = sshll.u32 %s1191_s10, 4  ;;  %s979_s8 = smov [#allocation28]   ;;  %s506_s13 = int_to_ptr.hbm [resolvable:$true] %s505_s13 }
 0x174   :  { %508 = dma.vmem_to_hbm [thread:$0]  %s504_s19, 16, %s506_s13, [#allocation24]  }
 0x175   :  { %s531_s11 = sshll.u32 %s979_s8, 4  ;;  %s533_s21 = sshll.u32 %s1196_s15, 4  ;;  %s532_s11 = int_to_ptr.vmem [resolvable:$true] %s531_s11  ;;  %s534_s21 = int_to_ptr.hbm [resolvable:$true] %s533_s21 }
 0x176   :  { %606 = vmatpush.xpose.msk.msra.mxu2 %vm394_vm4, %v390_v63  ;;  %607 = vmatpush.xpose.msk.msra.mxu3 %vm394_vm4, %v390_v63 }
 0x177   :  { %587 = vmatpush.xpose.msk.msra.mxu0 %vm394_vm4, %v390_v63  ;;  %605 = vmatpush.xpose.msk.msra.mxu1 %vm394_vm4, %v390_v63 }
 0x179   :  { %590 = vmatmul.msk.f32.vlgmr.msra.gmra.mxu2 %vm394_vm4, %v392_v61  ;;  %591 = vmatmul.msk.f32.vlgmr.msra.gmra.mxu3 %vm394_vm4, %v393_v60 }
 0x17a   :  { %588 = vmatmul.msk.f32.vlgmr.msra.gmra.mxu0 %vm394_vm4, %v390_v63  ;;  %589 = vmatmul.msk.f32.vlgmr.msra.gmra.mxu1 %vm394_vm4, %v391_v62 }
 0x1f7   :  { %v424_v3 = vpop.f32.mrf.mxu0  ;;  %v427_v4 = vpop.f32.mrf.mxu1 }
 0x1f8   :  { %v592_v5 = vadd.f32 -1.0, %v424_v3  ;;  %v593_v6 = vadd.f32 -1.0, %v427_v4 }
 0x1fa   :  { %v449_v9 = vsel %vm441_vm5, %v592_v5, %v424_v3  ;;  %v450_v10 = vsel %vm442_vm6, %v593_v6, %v427_v4 }
 0x1fb   :  { %v453_v11 = vand.u32 2147483647, %v449_v9  ;;  %v454_v12 = vand.u32 2147483647, %v450_v10 }
 0x1fc   :  { %v430_v13 = vpop.f32.mrf.mxu2  ;;  %v433_v14 = vpop.f32.mrf.mxu3 }
 0x1fd   :  { %v594_v15 = vadd.f32 -1.0, %v430_v13  ;;  %v595_v16 = vadd.f32 -1.0, %v433_v14  ;;  %v457_v17 = vsel %vm229_vm1, %v453_v11, 0.0  ;;  %v458_v18 = vsel %vm229_vm1, %v454_v12, 0.0 }
 0x1fe   :  { %v459_v23 = vadd.f32 %v458_v18, %v457_v17 }
 0x1ff   :  { %v451_v19 = vsel %vm443_vm7, %v594_v15, %v430_v13  ;;  %v452_v20 = vsel %vm444_vm8, %v595_v16, %v433_v14 }
 0x200   :  { %v455_v21 = vand.u32 2147483647, %v451_v19  ;;  %v456_v22 = vand.u32 2147483647, %v452_v20 }
 0x202   :  { %v460_v24 = vsel %vm229_vm1, %v455_v21, 0.0  ;;  %v462_v26 = vsel %vm229_vm1, %v456_v22, 0.0 }
 0x203   :  { %v461_v25 = vadd.f32 %v460_v24, %v459_v23 }
 0x205   :  { %v463_v27 = vadd.f32 %v462_v26, %v461_v25 }
 0x207   :  { %464 = vadd.xlane.f32.xlu0 %v463_v27 }
 0x27a   :  { %v465_v28 = vpop.xlane.xlu0 %464 }
 0x27b   :  { %v466_v29 = vrot.slane %v465_v28, 4 }
 0x27d   :  { %v467_v30 = vadd.f32 %v466_v29, %v465_v28 }
 0x27f   :  { %v468_v31 = vrot.slane %v467_v30, 2 }
 0x281   :  { %v469_v32 = vadd.f32 %v468_v31, %v467_v30 }
 0x283   :  { %v470_v33 = vrot.slane %v469_v32, 1 }
 0x285   :  { %v471_v34 = vadd.f32 %v470_v33, %v469_v32 }
 0x287   :  { %616 = vpush %v471_v34 }
 0x2b8   :  { %s617_s22 = spop %616 }
 0x2b9   :  { %s473_s23 = smul.f32 0.03125, %s617_s22 }
 0x2bb   :  { %v474_v35 = vstv %s473_s23 }
 0x2bc   :  { %475 = vst.msk [vmem:[#allocation28] sm:$0x1] %vm197_vm3, %v474_v35 }
 0x2bd   :  { %536 = dma.vmem_to_hbm [thread:$0]  %s532_s11, 16, %s534_s21, [#allocation27]  }
 0x2be   :  { %960 = dma.done.wait [#allocation12], 16  }
 0x2bf   :  { %961 = vsyncadd [#allocation12], 4294967280 }
 0x2c0   :  { %962 = dma.done.wait [#allocation24], 32  }
 0x2c1   :  { %963 = vsyncadd [#allocation24], 4294967264 }
 0x2c2   :  { %964 = dma.done.wait [#allocation27], 32  }
 0x2c3   :  { %965 = vsyncadd [#allocation27], 4294967264 }
 0x2c4   :  { %563 = vsyncpa [#allocation11], 1 }
 0x2c5   :  { %564 = vsyncpa [#allocation14], 1 }
 0x2c6   :  { %565 = vsyncpa [#allocation17], 1 }
 0x2c7   :  { %566 = vsyncpa [#allocation20], 1 }
 0x2c8   :  { %567 = vsyncpa [#allocation12], 1 }
 0x2c9   :  { %568 = vsyncpa [#allocation24], 1 }
 0x2ca   :  { %569 = vsyncpa [#allocation27], 1 }

</bundles_post_ra>
